<compile_context>
chip_gen: v5e
topology: v5e:2x2
jax: 0.10.0
libtpu: 0.0.40
codegen_flags: <defaults>
</compile_context>

<pallas_src>
import functools

import jax
import jax.numpy as jnp
from jax.experimental import pallas as pl
from jax.experimental.pallas import tpu as pltpu

_LANE = 128    # vreg lane width: last-dim alignment target
_SUBLANE = 8   # f32 sublane count: second-to-last-dim alignment target


def _round_up(n, m):
    return ((n + m - 1) // m) * m


# ----------------------------------------------------------------------------
# One-time hardware / capability probes
# ----------------------------------------------------------------------------

def _tpu_hw():
    """(physical_vmem_bytes, multi_tensorcore) with conservative fallbacks."""
    vmem_bytes = 64 << 20          # conservative: v7x per-TensorCore VMEM
    multi_core = False
    try:
        info = pltpu.get_tpu_info()
        v = getattr(info, "vmem_capacity_bytes", None)
        if v:
            vmem_bytes = int(v)
        nc = getattr(info, "num_cores", None) or getattr(info, "core_count", None)
        if nc:
            multi_core = int(nc) > 1
    except Exception:
        pass
    if not multi_core:
        try:
            kind = jax.devices()[0].device_kind.lower()
            # v4 / v5p are megacore; v7x has 2 TensorCores per chip.
            multi_core = ("v4" in kind) or ("v5p" in kind) or ("7" in kind)
        except Exception:
            pass
    return vmem_bytes, multi_core


_BUFFERED_ONE_OK = None


def _buffered_one_supported():
    """One-time probe: does this jax accept pl.Buffered(1) pipeline_mode?"""
    global _BUFFERED_ONE_OK
    if _BUFFERED_ONE_OK is None:
        try:
            spec = pl.BlockSpec((_SUBLANE, _LANE), lambda i: (0, 0),
                                pipeline_mode=pl.Buffered(1))

            def _probe_kernel(x_ref, o_ref):
                o_ref[...] = x_ref[...] * 2.0

            fn = pl.pallas_call(
                _probe_kernel,
                out_shape=jax.ShapeDtypeStruct((_SUBLANE, _LANE), jnp.float32),
                grid=(1,),
                in_specs=[spec],
                out_specs=pl.BlockSpec((_SUBLANE, _LANE), lambda i: (0, 0)),
            )
            jax.jit(fn).lower(
                jnp.zeros((_SUBLANE, _LANE), jnp.float32)).compile()
            _BUFFERED_ONE_OK = True
        except Exception:
            _BUFFERED_ONE_OK = False
    return _BUFFERED_ONE_OK


# ----------------------------------------------------------------------------
# Kernel
# ----------------------------------------------------------------------------

def mobius_mlp_kernel(x_ref, w1_ref, b1_ref, w2_ref, b2_ref, w3_ref, b3_ref,
                      o_ref, *, matmul_dtype):
    """One grid step == one hardware microbatch (row slab) of the batch.

    Fused hot path of the wrapped nn.Sequential:
        h = relu(x @ W1 + b1)
        h = relu(h @ W2 + b2)
        y =       h @ W3 + b3

    x and W are already stored in `matmul_dtype` (bf16 on the MXU by default);
    accumulation and the bias-add / ReLU epilogue stay in f32.
    """
    def linear(h, w_ref, b_ref):
        acc = jnp.dot(h, w_ref[...], preferred_element_type=jnp.float32)
        return acc + b_ref[...]

    h = jnp.maximum(linear(x_ref[...], w1_ref, b1_ref), 0.0).astype(matmul_dtype)
    h = jnp.maximum(linear(h, w2_ref, b2_ref), 0.0).astype(matmul_dtype)
    o_ref[...] = linear(h, w3_ref, b3_ref).astype(o_ref.dtype)


# ----------------------------------------------------------------------------
# Wrapper (the MobiusKernel.forward equivalent)
# ----------------------------------------------------------------------------

def _pad2(a, rows, cols, dtype):
    """Zero-pad / cast to (rows, cols, dtype); no-op copy-free when aligned."""
    if a.shape == (rows, cols) and a.dtype == jnp.dtype(dtype):
        return a
    out = jnp.zeros((rows, cols), dtype)
    return out.at[:a.shape[0], :a.shape[1]].set(a.astype(dtype))


def _mobius_forward_impl(x, params, *, matmul_dtype, target_rows_per_step):
    B, D_in = x.shape
    (w1, b1), (w2, b2), (w3, b3) = params
    H1, H2, D_out = w1.shape[1], w2.shape[1], w3.shape[1]
    out_dtype = x.dtype

    # Lane-dense padding: every feature dim up to a multiple of 128.
    D_in_p, H1_p, H2_p, D_out_p = (
        _round_up(d, _LANE) for d in (D_in, H1, H2, D_out))

    phys_vmem, multi_core = _tpu_hw()
    single_buffer_weights = _buffered_one_supported()

    wsize = jnp.dtype(matmul_dtype).itemsize      # weight / x-slab element size
    osize = jnp.dtype(out_dtype).itemsize
    wt_bufs = 1 if single_buffer_weights else 2
    w_elems = D_in_p * H1_p + H1_p * H2_p + H2_p * D_out_p

    def vmem_est(mb):
        return (
            wt_bufs * wsize * w_elems                                   # weights
            + wt_bufs * 4 * _SUBLANE * (H1_p + H2_p + D_out_p)          # biases
            + 2 * mb * wsize * D_in_p + 2 * mb * osize * D_out_p        # x / out
            + 4 * mb * (H1_p + H2_p + D_out_p)                          # f32 temps
        )

    # VMEM cap derived from the generation: ~80% of physical, never the whole
    # thing (leaves headroom for compiler-internal scratch).  ~51 MiB on v7x,
    # ~102 MiB on v5e/v6e.
    cap = max(min(int(phys_vmem * 0.8), phys_vmem - (8 << 20)), 32 << 20)

    # Hardware-driven microbatch size (decoupled from Mobius `chunks`):
    # multiple of 8 rows, start from target_rows_per_step, shrink until the
    # VMEM estimate fits the cap.  No forced multi-step grid on single-core
    # chips (v5e/v6e) — the grid is a serial loop there.
    B8 = _round_up(B, _SUBLANE)
    mb = min(B8, max(_round_up(target_rows_per_step, _SUBLANE), _SUBLANE))
    while mb > _SUBLANE and int(1.25 * vmem_est(mb)) + (2 << 20) > cap:
        mb = max(_round_up(mb // 2, _SUBLANE), _SUBLANE)
    n_steps = pl.cdiv(B8, mb)

    # Megacore split (v7x / megacore parts only): splitting duplicates the
    # resident-weight HBM->VMEM DMA per core, so only split when per-core
    # compute clearly exceeds the weight DMA (rough MXU-vs-HBM ratio).
    flops_total = 2 * B8 * w_elems
    weight_bytes = wsize * w_elems
    if (multi_core and n_steps == 1 and B8 >= 2 * _SUBLANE
            and flops_total // 2 > 500 * weight_bytes):
        n_steps = 2

    mb = _round_up(pl.cdiv(B8, n_steps), _SUBLANE)
    B_pad = mb * n_steps

    # Pad / cast operands.  _pad2 is a no-op (no HBM copy) when already
    # aligned and in the right dtype.  x is stored in the matmul dtype so the
    # slab DMA and the in-kernel operand are bf16 on the default path.
    x_p = _pad2(x, B_pad, D_in_p, matmul_dtype)
    w1_p = _pad2(w1, D_in_p, H1_p, matmul_dtype)
    w2_p = _pad2(w2, H1_p, H2_p, matmul_dtype)
    w3_p = _pad2(w3, H2_p, D_out_p, matmul_dtype)
    b1_p = _pad2(b1, 1, H1_p, jnp.float32)
    b2_p = _pad2(b2, 1, H2_p, jnp.float32)
    b3_p = _pad2(b3, 1, D_out_p, jnp.float32)

    vmem_limit = min(max(int(1.25 * vmem_est(mb)) + (2 << 20), 32 << 20), cap)

    def resident(shape):
        # Whole array resident in VMEM every grid step.  Constant index_map =>
        # the pipeline never re-DMAs it, so a single buffer suffices.
        kwargs = {}
        if single_buffer_weights:
            kwargs["pipeline_mode"] = pl.Buffered(1)
        return pl.BlockSpec(shape, lambda i: (0,) * len(shape), **kwargs)

    bytes_accessed = (
        B_pad * D_in_p * wsize                      # x slab reads
        + wsize * w_elems                           # weights
        + 4 * (H1_p + H2_p + D_out_p)               # biases
        + B_pad * D_out_p * osize                   # output writes
    )
    cost = pl.CostEstimate(flops=2 * B_pad * w_elems, transcendentals=0,
                           bytes_accessed=int(bytes_accessed))

    out = pl.pallas_call(
        functools.partial(mobius_mlp_kernel, matmul_dtype=matmul_dtype),
        out_shape=jax.ShapeDtypeStruct((B_pad, D_out_p), out_dtype),
        grid=(n_steps,),  # one grid step per hardware microbatch
        in_specs=[
            pl.BlockSpec((mb, D_in_p), lambda i: (i, 0)),   # microbatch slab of x
            resident((D_in_p, H1_p)), resident((1, H1_p)),
            resident((H1_p, H2_p)), resident((1, H2_p)),
            resident((H2_p, D_out_p)), resident((1, D_out_p)),
        ],
        out_specs=pl.BlockSpec((mb, D_out_p), lambda i: (i, 0)),    # gather
        compiler_params=pltpu.CompilerParams(
            dimension_semantics=("parallel",),  # microbatches are independent
            vmem_limit_bytes=vmem_limit,
        ),
        cost_estimate=cost,
    )(x_p, w1_p, b1_p, w2_p, b2_p, w3_p, b3_p)

    if B_pad != B or D_out_p != D_out:
        out = out[:B, :D_out]
    return out


def mobius_forward(x, params, chunks=None, *, matmul_dtype=jnp.bfloat16,
                   target_rows_per_step=512):
    """Equivalent of MobiusKernel.forward(): numerically just module(x).

    `chunks` only steers the original's CUDA-stream pipeline and has no effect
    on the values, so the TPU microbatch (grid) size is chosen from hardware
    constraints instead; `chunks` is accepted for API parity only.

    matmul_dtype: operands for the MXU (bf16 default on v5e/v6e/v7x; f32 for
    strict numerics; fp8 dtypes are plumbed through for v7x deployments).
    """
    del chunks  # device-orchestration knob only; see docstring.
    return _mobius_forward_impl(
        x, params, matmul_dtype=matmul_dtype,
        target_rows_per_step=target_rows_per_step)


# ----------------------------------------------------------------------------
# Test harness
# ----------------------------------------------------------------------------

def init_params(key, d_in, h1, h2, d_out):
    """Deterministic synthetic Linear parameters (half_mode=False -> float32)."""
    ks = jax.random.split(key, 6)

    def lin(kw, kb, fan_in, fan_out):
        bound = 1.0 / jnp.sqrt(fan_in)
        w = jax.random.uniform(kw, (fan_in, fan_out), jnp.float32, -bound, bound)
        b = jax.random.uniform(kb, (1, fan_out), jnp.float32, -bound, bound)
        return w, b

    return (
        lin(ks[0], ks[1], d_in, h1),
        lin(ks[2], ks[3], h1, h2),
        lin(ks[4], ks[5], h2, d_out),
    )


def reference_forward(x, params, matmul_dtype=jnp.float32):
    (w1, b1), (w2, b2), (w3, b3) = params

    def lin(h, w, b):
        return jnp.dot(h.astype(matmul_dtype), w.astype(matmul_dtype),
                       preferred_element_type=jnp.float32) + b

    h = jnp.maximum(lin(x, w1, b1), 0.0)
    h = jnp.maximum(lin(h.astype(matmul_dtype), w2, b2), 0.0)
    return lin(h.astype(matmul_dtype), w3, b3)


# TODO(synk): CUDA streams, ContiguousMemoryAllocator, parameter offload /
# prefetch hooks and ILP partitioning are device-placement machinery with no
# numerical effect on forward(); intentionally not modeled.
# TODO(synk): for production-scale layers whose weights exceed the VMEM cap,
# replace the resident-weight BlockSpecs with a K/N-tiled grid + f32
# accumulator (pl.when-gated init/finalize) instead of keeping whole W
# matrices resident.

if __name__ == "__main__":
    key = jax.random.PRNGKey(0)
    kx, kp = jax.random.split(key)

    B, D_IN, H1, H2, D_OUT = 16, 32, 64, 64, 32
    CHUNKS = 2  # MobiusKernel `chunks` (orchestration only; no numeric effect)

    x = jax.random.normal(kx, (B, D_IN), jnp.float32)
    params = init_params(kp, D_IN, H1, H2, D_OUT)

    # Default path: bf16 MXU operands, f32 accumulation + f32 epilogue.
    out_bf16 = jax.block_until_ready(mobius_forward(x, params, CHUNKS))
    ref_bf16 = reference_forward(x, params, matmul_dtype=jnp.bfloat16)
    assert out_bf16.shape == (B, D_OUT)
    assert jnp.allclose(out_bf16, ref_bf16, atol=2e-2, rtol=2e-2)

    # Strict f32 path (tight numeric check).
    out_f32 = jax.block_until_ready(
        mobius_forward(x, params, CHUNKS, matmul_dtype=jnp.float32))
    ref_f32 = reference_forward(x, params)
    assert out_f32.shape == (B, D_OUT)
    assert jnp.allclose(out_f32, ref_f32, atol=1e-4, rtol=1e-4)

    print("KERNEL_OK")
</pallas_src>

<mosaic_0001>
module attributes {stable_mosaic.version = 11 : i64} {
  func.func @mobius_mlp_kernel(%arg0: i32, %arg1: memref<16x128xbf16, #tpu.memory_space<vmem>>, %arg2: memref<128x128xbf16, #tpu.memory_space<vmem>>, %arg3: memref<1x128xf32, #tpu.memory_space<vmem>>, %arg4: memref<128x128xbf16, #tpu.memory_space<vmem>>, %arg5: memref<1x128xf32, #tpu.memory_space<vmem>>, %arg6: memref<128x128xbf16, #tpu.memory_space<vmem>>, %arg7: memref<1x128xf32, #tpu.memory_space<vmem>>, %arg8: memref<16x128xf32, #tpu.memory_space<vmem>>) attributes {dimension_semantics = [#tpu.dimension_semantics<parallel>], iteration_bounds = array<i64: 1>, scalar_prefetch = 0 : i64, scratch_operands = 0 : i64, tpu.core_type = #tpu.core_type<tc>, window_params = [{transform_indices = @transform_0, window_bounds = array<i64: 16, 128>}, {pipeline_mode = #tpu.pipeline_mode<synchronous>, transform_indices = @transform_1, window_bounds = array<i64: 128, 128>}, {pipeline_mode = #tpu.pipeline_mode<synchronous>, transform_indices = @transform_2, window_bounds = array<i64: 1, 128>}, {pipeline_mode = #tpu.pipeline_mode<synchronous>, transform_indices = @transform_3, window_bounds = array<i64: 128, 128>}, {pipeline_mode = #tpu.pipeline_mode<synchronous>, transform_indices = @transform_4, window_bounds = array<i64: 1, 128>}, {pipeline_mode = #tpu.pipeline_mode<synchronous>, transform_indices = @transform_5, window_bounds = array<i64: 128, 128>}, {pipeline_mode = #tpu.pipeline_mode<synchronous>, transform_indices = @transform_6, window_bounds = array<i64: 1, 128>}, {transform_indices = @transform_7, window_bounds = array<i64: 16, 128>}]} {
    %c0 = arith.constant 0 : index
    %c0_0 = arith.constant 0 : index
    %0 = vector.load %arg1[%c0, %c0_0] : memref<16x128xbf16, #tpu.memory_space<vmem>>, vector<16x128xbf16>
    %c0_1 = arith.constant 0 : index
    %c0_2 = arith.constant 0 : index
    %1 = vector.load %arg2[%c0_1, %c0_2] : memref<128x128xbf16, #tpu.memory_space<vmem>>, vector<128x128xbf16>
    %cst = arith.constant dense<0.000000e+00> : vector<16x128xf32>
    %2 = tpu.matmul %0, %1, %cst {dimension_numbers = #tpu.dot_dimension_numbers<[1], [0], [0], [1], [0, 0, 1, 1], [], []>} : vector<16x128xbf16>, vector<128x128xbf16>, vector<16x128xf32> -> vector<16x128xf32>
    %c0_3 = arith.constant 0 : index
    %c0_4 = arith.constant 0 : index
    %3 = vector.load %arg3[%c0_3, %c0_4] : memref<1x128xf32, #tpu.memory_space<vmem>>, vector<1x128xf32>
    %4 = vector.broadcast %3 : vector<1x128xf32> to vector<16x128xf32>
    %5 = arith.addf %2, %4 : vector<16x128xf32>
    %cst_5 = arith.constant 0.000000e+00 : f32
    %6 = vector.broadcast %cst_5 : f32 to vector<16x128xf32>
    %7 = arith.maximumf %5, %6 : vector<16x128xf32>
    %8 = arith.truncf %7 : vector<16x128xf32> to vector<16x128xbf16>
    %c0_6 = arith.constant 0 : index
    %c0_7 = arith.constant 0 : index
    %9 = vector.load %arg4[%c0_6, %c0_7] : memref<128x128xbf16, #tpu.memory_space<vmem>>, vector<128x128xbf16>
    %cst_8 = arith.constant dense<0.000000e+00> : vector<16x128xf32>
    %10 = tpu.matmul %8, %9, %cst_8 {dimension_numbers = #tpu.dot_dimension_numbers<[1], [0], [0], [1], [0, 0, 1, 1], [], []>} : vector<16x128xbf16>, vector<128x128xbf16>, vector<16x128xf32> -> vector<16x128xf32>
    %c0_9 = arith.constant 0 : index
    %c0_10 = arith.constant 0 : index
    %11 = vector.load %arg5[%c0_9, %c0_10] : memref<1x128xf32, #tpu.memory_space<vmem>>, vector<1x128xf32>
    %12 = vector.broadcast %11 : vector<1x128xf32> to vector<16x128xf32>
    %13 = arith.addf %10, %12 : vector<16x128xf32>
    %cst_11 = arith.constant 0.000000e+00 : f32
    %14 = vector.broadcast %cst_11 : f32 to vector<16x128xf32>
    %15 = arith.maximumf %13, %14 : vector<16x128xf32>
    %16 = arith.truncf %15 : vector<16x128xf32> to vector<16x128xbf16>
    %c0_12 = arith.constant 0 : index
    %c0_13 = arith.constant 0 : index
    %17 = vector.load %arg6[%c0_12, %c0_13] : memref<128x128xbf16, #tpu.memory_space<vmem>>, vector<128x128xbf16>
    %cst_14 = arith.constant dense<0.000000e+00> : vector<16x128xf32>
    %18 = tpu.matmul %16, %17, %cst_14 {dimension_numbers = #tpu.dot_dimension_numbers<[1], [0], [0], [1], [0, 0, 1, 1], [], []>} : vector<16x128xbf16>, vector<128x128xbf16>, vector<16x128xf32> -> vector<16x128xf32>
    %c0_15 = arith.constant 0 : index
    %c0_16 = arith.constant 0 : index
    %19 = vector.load %arg7[%c0_15, %c0_16] : memref<1x128xf32, #tpu.memory_space<vmem>>, vector<1x128xf32>
    %20 = vector.broadcast %19 : vector<1x128xf32> to vector<16x128xf32>
    %21 = arith.addf %18, %20 : vector<16x128xf32>
    %c0_17 = arith.constant 0 : index
    %c0_18 = arith.constant 0 : index
    %22 = vector.load %arg8[%c0_17, %c0_18] : memref<16x128xf32, #tpu.memory_space<vmem>>, vector<16x128xf32>
    tpu.vector_store %arg8[%c0_17, %c0_18], %21 {strides = array<i32>} : memref<16x128xf32, #tpu.memory_space<vmem>>, vector<16x128xf32>,
    return
  }
  func.func @transform_0(%arg0: i32) -> (i32, i32) {
    %c0_i32 = arith.constant 0 : i32
    %c0_i32_0 = arith.constant 0 : i32
    return %arg0, %c0_i32 : i32, i32
  }
  func.func @transform_1(%arg0: i32) -> (i32, i32) {
    %c0_i32 = arith.constant 0 : i32
    %c0_i32_0 = arith.constant 0 : i32
    %c0_i32_1 = arith.constant 0 : i32
    return %c0_i32, %c0_i32_0 : i32, i32
  }
  func.func @transform_2(%arg0: i32) -> (i32, i32) {
    %c0_i32 = arith.constant 0 : i32
    %c0_i32_0 = arith.constant 0 : i32
    %c0_i32_1 = arith.constant 0 : i32
    return %c0_i32, %c0_i32_0 : i32, i32
  }
  func.func @transform_3(%arg0: i32) -> (i32, i32) {
    %c0_i32 = arith.constant 0 : i32
    %c0_i32_0 = arith.constant 0 : i32
    %c0_i32_1 = arith.constant 0 : i32
    return %c0_i32, %c0_i32_0 : i32, i32
  }
  func.func @transform_4(%arg0: i32) -> (i32, i32) {
    %c0_i32 = arith.constant 0 : i32
    %c0_i32_0 = arith.constant 0 : i32
    %c0_i32_1 = arith.constant 0 : i32
    return %c0_i32, %c0_i32_0 : i32, i32
  }
  func.func @transform_5(%arg0: i32) -> (i32, i32) {
    %c0_i32 = arith.constant 0 : i32
    %c0_i32_0 = arith.constant 0 : i32
    %c0_i32_1 = arith.constant 0 : i32
    return %c0_i32, %c0_i32_0 : i32, i32
  }
  func.func @transform_6(%arg0: i32) -> (i32, i32) {
    %c0_i32 = arith.constant 0 : i32
    %c0_i32_0 = arith.constant 0 : i32
    %c0_i32_1 = arith.constant 0 : i32
    return %c0_i32, %c0_i32_0 : i32, i32
  }
  func.func @transform_7(%arg0: i32) -> (i32, i32) {
    %c0_i32 = arith.constant 0 : i32
    %c0_i32_0 = arith.constant 0 : i32
    return %arg0, %c0_i32 : i32, i32
  }
}

</mosaic_0001>

<bundles_post_ra>
// kernel: tpu_custom_call.1
= control target key start
LH: loop header
LB: loop body
LE: loop exit
PB: predicated region body
PF: predicated region fallthrough
CT: control target
= control target key end

     0   :  { %12 = vsyncpa [#allocation3], 0  ;;  %s711_s0 = inlined_call_operand.hbm [shape: bf16[16,128], index: 0, kind: input, shape index: {}]   ;;  %s712_s1 = inlined_call_operand.hbm [shape: bf16[128,128], index: 1, kind: input, shape index: {}]   ;;  %s713_s2 = inlined_call_operand.vmem [shape: f32[1,128], index: 2, kind: input, shape index: {}]   ;;  %s714_s3 = inlined_call_operand.hbm [shape: bf16[128,128], index: 3, kind: input, shape index: {}]   ;;  %s715_s4 = inlined_call_operand.vmem [shape: f32[1,128], index: 4, kind: input, shape index: {}]   ;;  %s716_s5 = inlined_call_operand.hbm [shape: bf16[128,128], index: 5, kind: input, shape index: {}]   ;;  %s717_s6 = inlined_call_operand.vmem [shape: f32[1,128], index: 6, kind: input, shape index: {}]   ;;  %s718_s7 = inlined_call_operand.hbm [shape: f32[16,128], index: 7, kind: output, shape index: {}]  }
   0x1   :  { %13 = vsyncpa [#allocation6], 0 }
   0x2   :  { %14 = vsyncpa [#allocation9], 0 }
   0x3   :  { %15 = vsyncpa [#allocation4], 0  ;;  %s33_s26 = sshll.u32 %s712_s1, 4  ;;  %s638_s27 = smov [#allocation5]   ;;  %s34_s26 = int_to_ptr.hbm [resolvable:$true] %s33_s26 }
   0x4   :  { %s35_s28 = sshll.u32 %s638_s27, 4  ;;  %s20_s8 = sshll.u32 %s711_s0, 4  ;;  %s36_s28 = int_to_ptr.vmem [resolvable:$true] %s35_s28  ;;  %s21_s8 = int_to_ptr.hbm [resolvable:$true] %s20_s8 }
   0x5   :  { %s639_s9 = smov 64   ;;  %s640_s10 = smov 4  }
   0x6   :  { %41 = dma.hbm_to_vmem [thread:$0]  %s34_s26, 1024, %s36_s28, [#allocation6], %s639_s9, %s639_s9, %s640_s10  }
   0x7   :  { %s641_s11 = smov [#allocation2]   ;;  %s48_s15 = sshll.u32 %s714_s3, 4  ;;  %s49_s15 = int_to_ptr.hbm [resolvable:$true] %s48_s15 }
   0x8   :  { %s22_s12 = sshll.u32 %s641_s11, 4  ;;  %s63_s17 = sshll.u32 %s716_s5, 4  ;;  %s23_s12 = int_to_ptr.vmem [resolvable:$true] %s22_s12  ;;  %s64_s17 = int_to_ptr.hbm [resolvable:$true] %s63_s17 }
   0x9   :  { %28 = dma.hbm_to_vmem [thread:$0]  %s21_s8, 128, %s23_s12, [#allocation3], %s639_s9, %s639_s9, %s640_s10  }
   0xa   :  { %s642_s18 = smov [#allocation7]   ;;  %s643_s0 = smov [#allocation8]  }
   0xb   :  { %s50_s19 = sshll.u32 %s642_s18, 4  ;;  %s65_s20 = sshll.u32 %s643_s0, 4  ;;  %s51_s19 = int_to_ptr.vmem [resolvable:$true] %s50_s19  ;;  %s66_s20 = int_to_ptr.vmem [resolvable:$true] %s65_s20 }
   0xc   :  { %56 = dma.hbm_to_vmem [thread:$0]  %s49_s15, 1024, %s51_s19, [#allocation6], %s639_s9, %s639_s9, %s640_s10  }
   0xd   :  { %71 = dma.hbm_to_vmem [thread:$0]  %s64_s17, 1024, %s66_s20, [#allocation9], %s639_s9, %s639_s9, %s640_s10  }
   0xe   :  { %630 = dma.done.wait [#allocation3], 128  }
   0xf   :  { %631 = vsyncadd [#allocation3], 4294967168 }
  0x10   :  { %632 = dma.done.wait [#allocation6], 2048  }
  0x11   :  { %633 = vsyncadd [#allocation6], 4294965248 }
  0x12   :  { %634 = dma.done.wait [#allocation9], 1024  }
  0x13   :  { %635 = vsyncadd [#allocation9], 4294966272  ;;  %v481_v0 = vld [vmem:[#allocation5 + $0x38] sm:$0xff]  ;;  %v480_v1 = vld [vmem:[#allocation5 + $0x30] sm:$0xff]  ;;  %s644_s24 = smov [#allocation10]   ;;  %s645_s28 = smov 128  }
  0x14   :  { %166 = vmatpush.bf16.msra.mxu0 %v481_v0  ;;  %v489_v2 = vld [vmem:[#allocation7 + $0x38] sm:$0xff]  ;;  %v488_v3 = vld [vmem:[#allocation7 + $0x30] sm:$0xff]  ;;  %v479_v4 = vld [vmem:[#allocation5 + $0x28] sm:$0xff]  ;;  %s356_s25 = sshll.u32 %s644_s24, 4  ;;  %s646_s29 = smov 8   ;;  %s357_s25 = int_to_ptr.vmem [resolvable:$true] %s356_s25 }
  0x15   :  { %251 = vmatpush.bf16.msra.mxu1 %v489_v2  ;;  %v487_v5 = vld [vmem:[#allocation7 + $0x28] sm:$0xff]  ;;  %v478_v6 = vld [vmem:[#allocation5 + $0x20] sm:$0xff]  ;;  %v477_v8 = vld [vmem:[#allocation5 + $0x18] sm:$0xff] }
  0x16   :  { %v486_v7 = vld [vmem:[#allocation7 + $0x20] sm:$0xff]  ;;  %v476_v9 = vld [vmem:[#allocation5 + $0x10] sm:$0xff]  ;;  %v475_v10 = vld [vmem:[#allocation5 + $0x8] sm:$0xff] }
  0x17   :  { %v474_v11 = vld [vmem:[#allocation5] sm:$0xff]  ;;  %v473_v12 = vld [vmem:[#allocation2] sm:$0xff]  ;;  %v484_v14 = vld [vmem:[#allocation7 + $0x10] sm:$0xff] }
  0x18   :  { %167 = vmatpush.bf16.msra.mxu0 %v480_v1  ;;  %v485_v13 = vld [vmem:[#allocation7 + $0x18] sm:$0xff]  ;;  %v483_v15 = vld [vmem:[#allocation7 + $0x8] sm:$0xff]  ;;  %v482_v16 = vld [vmem:[#allocation7] sm:$0xff] }
  0x19   :  { %252 = vmatpush.bf16.msra.mxu1 %v488_v3  ;;  %v497_v17 = vld [vmem:[#allocation8 + $0x38] sm:$0xff]  ;;  %v496_v18 = vld [vmem:[#allocation8 + $0x30] sm:$0xff]  ;;  %v495_v19 = vld [vmem:[#allocation8 + $0x28] sm:$0xff] }
  0x1a   :  { %336 = vmatpush.bf16.msra.mxu2 %v497_v17  ;;  %v494_v20 = vld [vmem:[#allocation8 + $0x20] sm:$0xff]  ;;  %v507_v22 = vld [vmem:[%s713_s2] ss:$0 sm:$0xff]  ;;  %v492_v30 = vld [vmem:[#allocation8 + $0x10] sm:$0xff] }
  0x1b   :  { %v493_v29 = vld [vmem:[#allocation8 + $0x18] sm:$0xff]  ;;  %v491_v31 = vld [vmem:[#allocation8 + $0x8] sm:$0xff]  ;;  %v490_v32 = vld [vmem:[#allocation8] sm:$0xff] }
  0x1c   :  { %168 = vmatpush.bf16.msra.mxu0 %v479_v4  ;;  %v508_v34 = vld [vmem:[%s715_s4] ss:$0 sm:$0xff]  ;;  %s358_s4 = sshll.u32 %s718_s7, 4  ;;  %s359_s4 = int_to_ptr.hbm [resolvable:$true] %s358_s4 }
  0x1d   :  { %253 = vmatpush.bf16.msra.mxu1 %v487_v5  ;;  %v509_v41 = vld [vmem:[%s717_s6] ss:$0 sm:$0xff] }
  0x1e   :  { %337 = vmatpush.bf16.msra.mxu2 %v496_v18 }
  0x20   :  { %169 = vmatpush.bf16.msra.mxu0 %v478_v6 }
  0x21   :  { %254 = vmatpush.bf16.msra.mxu1 %v486_v7 }
  0x22   :  { %338 = vmatpush.bf16.msra.mxu2 %v495_v19 }
  0x24   :  { %170 = vmatpush.bf16.msra.mxu0 %v477_v8 }
  0x25   :  { %255 = vmatpush.bf16.msra.mxu1 %v485_v13 }
  0x26   :  { %339 = vmatpush.bf16.msra.mxu2 %v494_v20 }
  0x28   :  { %171 = vmatpush.bf16.msra.mxu0 %v476_v9 }
  0x29   :  { %256 = vmatpush.bf16.msra.mxu1 %v484_v14 }
  0x2a   :  { %340 = vmatpush.bf16.msra.mxu2 %v493_v29 }
  0x2c   :  { %172 = vmatpush.bf16.msra.mxu0 %v475_v10 }
  0x2d   :  { %257 = vmatpush.bf16.msra.mxu1 %v483_v15 }
  0x2e   :  { %341 = vmatpush.bf16.msra.mxu2 %v492_v30 }
  0x30   :  { %173 = vmatpush.bf16.msra.mxu0 %v474_v11 }
  0x31   :  { %258 = vmatpush.bf16.msra.mxu1 %v482_v16 }
  0x32   :  { %342 = vmatpush.bf16.msra.mxu2 %v491_v31 }
  0x33   :  { %174 = vmatmul.bf16.vlgmr.msra.gmra.mxu0 %v473_v12 }
  0x36   :  { %343 = vmatpush.bf16.msra.mxu2 %v490_v32 }
  0xb0   :  { %v175_v21 = vpop.f32.mrf.mxu0 }
  0xb1   :  { %v176_v23 = vadd.f32 %v507_v22, %v175_v21 }
  0xb3   :  { %v180_v26 = vmax.f32 %v176_v23, 0.0 }
  0xb8   :  { %v177_v24 = vpop.f32.mrf.mxu0 }
  0xb9   :  { %v178_v25 = vadd.f32 %v507_v22, %v177_v24 }
  0xbb   :  { %v181_v27 = vmax.f32 %v178_v25, 0.0 }
  0xbd   :  { %v182_v28 = vpack.c.bf16 %v181_v27, %v180_v26 }
  0xbf   :  { %259 = vmatmul.bf16.vlgmr.msra.gmra.mxu1 %v182_v28 }
 0x13c   :  { %v260_v33 = vpop.f32.mrf.mxu1 }
 0x13d   :  { %v261_v35 = vadd.f32 %v508_v34, %v260_v33 }
 0x13f   :  { %v265_v38 = vmax.f32 %v261_v35, 0.0 }
 0x144   :  { %v262_v36 = vpop.f32.mrf.mxu1 }
 0x145   :  { %v263_v37 = vadd.f32 %v508_v34, %v262_v36 }
 0x147   :  { %v266_v39 = vmax.f32 %v263_v37, 0.0 }
 0x149   :  { %v267_v40 = vpack.c.bf16 %v266_v39, %v265_v38 }
 0x14b   :  { %344 = vmatmul.bf16.vlgmr.msra.gmra.mxu2 %v267_v40 }
 0x1ce   :  { %v345_v42 = vpop.f32.mrf.mxu2 }
 0x1cf   :  { %v346_v43 = vadd.f32 %v509_v41, %v345_v42 }
 0x1d1   :  { %350 = vst [vmem:[#allocation10] sm:$0xff] %v346_v43 }
 0x1d6   :  { %v347_v44 = vpop.f32.mrf.mxu2 }
 0x1d7   :  { %v348_v45 = vadd.f32 %v509_v41, %v347_v44 }
 0x1d9   :  { %351 = vst [vmem:[#allocation10 + $0x8] sm:$0xff] %v348_v45 }
 0x1da   :  { %364 = dma.vmem_to_hbm [thread:$0]  %s357_s25, 256, %s359_s4, [#allocation4], %s645_s28, %s645_s28, %s646_s29  }
 0x1db   :  { %636 = dma.done.wait [#allocation4], 256  }
 0x1dc   :  { %637 = vsyncadd [#allocation4], 4294967040 }
 0x1dd   :  { %369 = vsyncpa [#allocation3], 1 }
 0x1de   :  { %370 = vsyncpa [#allocation6], 1 }
 0x1df   :  { %371 = vsyncpa [#allocation9], 1 }
 0x1e0   :  { %372 = vsyncpa [#allocation4], 1 }

</bundles_post_ra>
